<compile_context>
chip_gen: v5e
topology: v5e:2x2
jax: 0.10.0
libtpu: 0.0.40
codegen_flags: <defaults>
</compile_context>

<pallas_src>
import functools
import math

import jax
import jax.numpy as jnp
from jax import lax
from jax.experimental import pallas as pl
from jax.experimental.pallas import tpu as pltpu


def _round_up(x, m):
    return (x + m - 1) // m * m


def _vmem_limit_bytes():
    """Generation-aware VMEM budget: v7x has 64 MiB/TC, v5e/v6e have 128 MiB."""
    cap = 128 * 1024 * 1024
    try:
        cap = int(pltpu.get_tpu_info().vmem_capacity_bytes)
    except Exception:
        pass
    if cap <= 64 * 1024 * 1024:
        return 28 * 1024 * 1024          # v7x-class: leave headroom
    return 64 * 1024 * 1024              # v5e / v6e


def _pick_row_tile(Ho, Wo, target_m=512):
    """Output-row tile TR (divides Ho).  Targets TR*Wo <= target_m flattened
    output pixels per grid step so the dot result stays register/MRB friendly.
    When Ho is split, TR*Wo is kept 16-aligned (sublane-safe for bf16 blocks);
    otherwise fall back to a single row tile per batch element."""
    if Ho * Wo <= target_m:
        return Ho
    best = Ho
    for tr in range(1, Ho):
        if Ho % tr == 0 and tr * Wo <= target_m and (tr * Wo) % 16 == 0:
            best = tr
    return best


# ---------------------------------------------------------------------------
# Pallas kernel: one (TR output rows) x (all output cols) tile of the conv.
#   x_ref  : (1, TR, Ws=Wo+1, 6C) bf16, lane order (kh, width-phase pw, c):
#            x[oi, jw, kh*2C + pw*C + c] == x_padded[2*oi + kh, 2*jw + pw, c]
#   w_ref  : (9C, Co_pad) bf16, row order (kh, kw, c)
#   b_ref  : (1, Co_pad)  f32
#   o_ref  : (1, TR*Wo, Co_pad) bf16
#   col_ref: (TR*Wo, 9C) bf16 VMEM scratch -- the im2col slab
# ---------------------------------------------------------------------------
def _down_conv_kernel(x_ref, w_ref, b_ref, o_ref, col_ref, *, TR, Wo, C):
    M = TR * Wo
    # Build the K = 9C im2col slab with 6 explicit, rectangular tap copies.
    for kh in range(3):
        src = kh * 2 * C          # lane offset of (kh, pw=0, c=0) in x_ref
        dst = kh * 3 * C          # lane offset of (kh, kw=0, c=0) in col_ref
        # kw = 0, 1  (input cols 2*oj + {0,1}  ->  jw = oj, pw = {0,1}).
        col_ref[:, dst:dst + 2 * C] = (
            x_ref[0, :, 0:Wo, src:src + 2 * C].reshape(M, 2 * C))
        # kw = 2     (input col  2*oj + 2     ->  jw = oj + 1, pw = 0).
        col_ref[:, dst + 2 * C:dst + 3 * C] = (
            x_ref[0, :, 1:Wo + 1, src:src + C].reshape(M, C))
    # Single big-K MXU matmul, f32 accumulation, bias folded into the epilogue.
    acc = jnp.dot(col_ref[...], w_ref[...],
                  preferred_element_type=jnp.float32)       # (M, Co_pad)
    o_ref[0] = (acc + b_ref[...]).astype(o_ref.dtype)


def _downsample_pallas(xg, wk, b2, *, B, Ho, Wo, C, Co_pad, TR):
    Ws = Wo + 1
    M = TR * Wo
    n_rt = Ho // TR
    kernel = functools.partial(_down_conv_kernel, TR=TR, Wo=Wo, C=C)

    flops = 2 * B * Ho * Wo * 9 * C * Co_pad
    bytes_accessed = (xg.size * 2            # bf16 activations (packed planes)
                      + wk.size * 2          # bf16 weights
                      + b2.size * 4          # f32 bias
                      + B * Ho * Wo * Co_pad * 2)   # bf16 output

    return pl.pallas_call(
        kernel,
        out_shape=jax.ShapeDtypeStruct((B, Ho * Wo, Co_pad), jnp.bfloat16),
        grid_spec=pltpu.PrefetchScalarGridSpec(
            num_scalar_prefetch=0,
            grid=(B, n_rt),
            in_specs=[
                pl.BlockSpec((1, TR, Ws, 6 * C), lambda b, r: (b, r, 0, 0)),
                pl.BlockSpec((9 * C, Co_pad), lambda b, r: (0, 0)),
                pl.BlockSpec((1, Co_pad), lambda b, r: (0, 0)),
            ],
            out_specs=pl.BlockSpec((1, M, Co_pad), lambda b, r: (b, r, 0)),
            scratch_shapes=[pltpu.VMEM((M, 9 * C), jnp.bfloat16)],
        ),
        compiler_params=pltpu.CompilerParams(
            dimension_semantics=("parallel", "parallel"),
            vmem_limit_bytes=_vmem_limit_bytes(),
        ),
        cost_estimate=pl.CostEstimate(
            flops=flops, transcendentals=0, bytes_accessed=bytes_accessed),
    )(xg, wk, b2)


# ---------------------------------------------------------------------------
# NHWC entry point (preferred: keep the whole UNet NHWC / bf16).
# ---------------------------------------------------------------------------
@jax.jit
def downsample_forward_nhwc(x_nhwc, weight_oihw, bias):
    B, H, W, C = x_nhwc.shape
    Co, Ci = weight_oihw.shape[0], weight_oihw.shape[1]
    assert Ci == C, (Ci, C)
    Ho = (H - 1) // 2 + 1
    Wo = (W - 1) // 2 + 1
    Ws = Wo + 1
    Co_pad = _round_up(Co, 128)
    TR = _pick_row_tile(Ho, Wo)

    # Cast to bf16 BEFORE any layout work so the pre-pass moves half the bytes.
    xb = x_nhwc.astype(jnp.bfloat16)

    # Zero pad (conv padding=1) to exactly the rows/cols the taps can touch:
    # padded row index 2*oi + kh, padded col index 2*oj + kw.
    Hp = 2 * Ho + 1
    Wp = 2 * Ws                       # = 2*Wo + 2; last col never read (zero)
    xp = jnp.pad(xb, ((0, 0), (1, Hp - 1 - H), (1, Wp - 1 - W), (0, 0)))

    # Pack (kh, width-phase, C) onto lanes:
    #   xg[b, oi, jw, kh*2C + pw*C + c] == xp[b, 2*oi + kh, 2*jw + pw, c]
    rows = jnp.stack([xp[:, kh:kh + 2 * Ho:2] for kh in range(3)], axis=2)
    # rows: (B, Ho, 3, Wp, C)
    xg = rows.reshape(B, Ho, 3, Ws, 2, C).transpose(0, 1, 3, 2, 4, 5)
    xg = xg.reshape(B, Ho, Ws, 6 * C)

    # Weight OIHW -> rows ordered (kh, kw, ci), cols = co (padded to 128 lanes).
    wk = jnp.transpose(weight_oihw, (2, 3, 1, 0)).astype(jnp.bfloat16)
    wk = wk.reshape(9 * C, Co)
    wk = jnp.pad(wk, ((0, 0), (0, Co_pad - Co)))
    b2 = jnp.pad(bias.astype(jnp.float32), (0, Co_pad - Co)).reshape(1, Co_pad)

    out = _downsample_pallas(xg, wk, b2, B=B, Ho=Ho, Wo=Wo, C=C,
                             Co_pad=Co_pad, TR=TR)
    out = out.reshape(B, Ho, Wo, Co_pad)
    return out[..., :Co]              # bf16 NHWC


# ---------------------------------------------------------------------------
# NCHW drop-in wrapper (PyTorch layout / dtype parity).  A real UNet should
# stay NHWC bf16 end-to-end and call downsample_forward_nhwc directly.
# ---------------------------------------------------------------------------
@jax.jit
def downsample_forward(x_nchw, weight_oihw, bias):
    x = jnp.transpose(x_nchw, (0, 2, 3, 1))
    out = downsample_forward_nhwc(x, weight_oihw, bias)
    return jnp.transpose(out, (0, 3, 1, 2)).astype(x_nchw.dtype)


# ---------------------------------------------------------------------------
if __name__ == "__main__":
    B, C, H, W = 2, 4, 16, 16

    key = jax.random.PRNGKey(0)
    kx, kw, kb = jax.random.split(key, 3)

    x = jax.random.normal(kx, (B, C, H, W), dtype=jnp.float32)

    # Deterministic synthetic parameters (Conv2d(C, C, 3, 3) shapes).
    fan_in = C * 3 * 3
    bound = 1.0 / math.sqrt(fan_in)
    weight = jax.random.uniform(kw, (C, C, 3, 3), jnp.float32, -bound, bound)
    bias = jax.random.uniform(kb, (C,), jnp.float32, -bound, bound)

    out = downsample_forward(x, weight, bias)
    out = jax.block_until_ready(out)
    assert out.shape == (B, C, H // 2, W // 2), out.shape

    # Reference 1: exact f32 conv (loose tol; kernel is bf16-in/f32-acc/bf16-out).
    ref_f32 = lax.conv_general_dilated(
        x, weight, window_strides=(2, 2), padding=((1, 1), (1, 1)),
        dimension_numbers=("NCHW", "OIHW", "NCHW"),
    ) + bias[None, :, None, None]
    assert jnp.allclose(out, ref_f32, atol=5e-2, rtol=5e-2), float(
        jnp.max(jnp.abs(out - ref_f32)))

    # Reference 2: conv on bf16-quantized inputs with f32 accumulation
    # (apples-to-apples up to the kernel's bf16 output rounding).
    xq = x.astype(jnp.bfloat16).astype(jnp.float32)
    wq = weight.astype(jnp.bfloat16).astype(jnp.float32)
    ref_bf16 = lax.conv_general_dilated(
        xq, wq, window_strides=(2, 2), padding=((1, 1), (1, 1)),
        dimension_numbers=("NCHW", "OIHW", "NCHW"),
    ) + bias[None, :, None, None]
    assert jnp.allclose(out, ref_bf16, atol=2.5e-2, rtol=2.5e-2), float(
        jnp.max(jnp.abs(out - ref_bf16)))

    print("KERNEL_OK")
</pallas_src>

<mosaic_0001>
module attributes {stable_mosaic.version = 11 : i64} {
  func.func @_down_conv_kernel(%arg0: i32, %arg1: i32, %arg2: memref<1x8x9x24xbf16, #tpu.memory_space<vmem>>, %arg3: memref<36x128xbf16, #tpu.memory_space<vmem>>, %arg4: memref<1x128xf32, #tpu.memory_space<vmem>>, %arg5: memref<1x64x128xbf16, #tpu.memory_space<vmem>>, %arg6: memref<64x36xbf16, #tpu.memory_space<vmem>>) attributes {dimension_semantics = [#tpu.dimension_semantics<parallel>, #tpu.dimension_semantics<parallel>], iteration_bounds = array<i64: 2, 1>, scalar_prefetch = 0 : i64, scratch_operands = 1 : i64, tpu.core_type = #tpu.core_type<tc>, window_params = [{transform_indices = @transform_0, window_bounds = array<i64: 1, 8, 9, 24>}, {pipeline_mode = #tpu.pipeline_mode<synchronous>, transform_indices = @transform_1, window_bounds = array<i64: 36, 128>}, {pipeline_mode = #tpu.pipeline_mode<synchronous>, transform_indices = @transform_2, window_bounds = array<i64: 1, 128>}, {transform_indices = @transform_3, window_bounds = array<i64: 1, 64, 128>}]} {
    %c0 = arith.constant 0 : index
    %c0_0 = arith.constant 0 : index
    %c0_1 = arith.constant 0 : index
    %c0_2 = arith.constant 0 : index
    %0 = vector.load %arg2[%c0, %c0_0, %c0_1, %c0_2] : memref<1x8x9x24xbf16, #tpu.memory_space<vmem>>, vector<1x8x8x8xbf16>
    %1 = vector.shape_cast %0 : vector<1x8x8x8xbf16> to vector<8x8x8xbf16>
    %2 = vector.shape_cast %1 : vector<8x8x8xbf16> to vector<64x8xbf16>
    %c0_3 = arith.constant 0 : index
    %c0_4 = arith.constant 0 : index
    %3 = vector.load %arg6[%c0_3, %c0_4] : memref<64x36xbf16, #tpu.memory_space<vmem>>, vector<64x8xbf16>
    tpu.vector_store %arg6[%c0_3, %c0_4], %2 {strides = array<i32>} : memref<64x36xbf16, #tpu.memory_space<vmem>>, vector<64x8xbf16>,
    %c0_5 = arith.constant 0 : index
    %c0_6 = arith.constant 0 : index
    %c1 = arith.constant 1 : index
    %c0_7 = arith.constant 0 : index
    %4 = vector.load %arg2[%c0_5, %c0_6, %c1, %c0_7] : memref<1x8x9x24xbf16, #tpu.memory_space<vmem>>, vector<1x8x8x4xbf16>
    %5 = vector.shape_cast %4 : vector<1x8x8x4xbf16> to vector<8x8x4xbf16>
    %6 = vector.shape_cast %5 : vector<8x8x4xbf16> to vector<64x4xbf16>
    %c0_8 = arith.constant 0 : index
    %c8 = arith.constant 8 : index
    %7 = vector.load %arg6[%c0_8, %c8] : memref<64x36xbf16, #tpu.memory_space<vmem>>, vector<64x4xbf16>
    tpu.vector_store %arg6[%c0_8, %c8], %6 {strides = array<i32>} : memref<64x36xbf16, #tpu.memory_space<vmem>>, vector<64x4xbf16>,
    %c0_9 = arith.constant 0 : index
    %c0_10 = arith.constant 0 : index
    %c0_11 = arith.constant 0 : index
    %c8_12 = arith.constant 8 : index
    %8 = vector.load %arg2[%c0_9, %c0_10, %c0_11, %c8_12] : memref<1x8x9x24xbf16, #tpu.memory_space<vmem>>, vector<1x8x8x8xbf16>
    %9 = vector.shape_cast %8 : vector<1x8x8x8xbf16> to vector<8x8x8xbf16>
    %10 = vector.shape_cast %9 : vector<8x8x8xbf16> to vector<64x8xbf16>
    %c0_13 = arith.constant 0 : index
    %c12 = arith.constant 12 : index
    %11 = vector.load %arg6[%c0_13, %c12] : memref<64x36xbf16, #tpu.memory_space<vmem>>, vector<64x8xbf16>
    tpu.vector_store %arg6[%c0_13, %c12], %10 {strides = array<i32>} : memref<64x36xbf16, #tpu.memory_space<vmem>>, vector<64x8xbf16>,
    %c0_14 = arith.constant 0 : index
    %c0_15 = arith.constant 0 : index
    %c1_16 = arith.constant 1 : index
    %c8_17 = arith.constant 8 : index
    %12 = vector.load %arg2[%c0_14, %c0_15, %c1_16, %c8_17] : memref<1x8x9x24xbf16, #tpu.memory_space<vmem>>, vector<1x8x8x4xbf16>
    %13 = vector.shape_cast %12 : vector<1x8x8x4xbf16> to vector<8x8x4xbf16>
    %14 = vector.shape_cast %13 : vector<8x8x4xbf16> to vector<64x4xbf16>
    %c0_18 = arith.constant 0 : index
    %c20 = arith.constant 20 : index
    %15 = vector.load %arg6[%c0_18, %c20] : memref<64x36xbf16, #tpu.memory_space<vmem>>, vector<64x4xbf16>
    tpu.vector_store %arg6[%c0_18, %c20], %14 {strides = array<i32>} : memref<64x36xbf16, #tpu.memory_space<vmem>>, vector<64x4xbf16>,
    %c0_19 = arith.constant 0 : index
    %c0_20 = arith.constant 0 : index
    %c0_21 = arith.constant 0 : index
    %c16 = arith.constant 16 : index
    %16 = vector.load %arg2[%c0_19, %c0_20, %c0_21, %c16] : memref<1x8x9x24xbf16, #tpu.memory_space<vmem>>, vector<1x8x8x8xbf16>
    %17 = vector.shape_cast %16 : vector<1x8x8x8xbf16> to vector<8x8x8xbf16>
    %18 = vector.shape_cast %17 : vector<8x8x8xbf16> to vector<64x8xbf16>
    %c0_22 = arith.constant 0 : index
    %c24 = arith.constant 24 : index
    %19 = vector.load %arg6[%c0_22, %c24] : memref<64x36xbf16, #tpu.memory_space<vmem>>, vector<64x8xbf16>
    tpu.vector_store %arg6[%c0_22, %c24], %18 {strides = array<i32>} : memref<64x36xbf16, #tpu.memory_space<vmem>>, vector<64x8xbf16>,
    %c0_23 = arith.constant 0 : index
    %c0_24 = arith.constant 0 : index
    %c1_25 = arith.constant 1 : index
    %c16_26 = arith.constant 16 : index
    %20 = vector.load %arg2[%c0_23, %c0_24, %c1_25, %c16_26] : memref<1x8x9x24xbf16, #tpu.memory_space<vmem>>, vector<1x8x8x4xbf16>
    %21 = vector.shape_cast %20 : vector<1x8x8x4xbf16> to vector<8x8x4xbf16>
    %22 = vector.shape_cast %21 : vector<8x8x4xbf16> to vector<64x4xbf16>
    %c0_27 = arith.constant 0 : index
    %c32 = arith.constant 32 : index
    %23 = vector.load %arg6[%c0_27, %c32] : memref<64x36xbf16, #tpu.memory_space<vmem>>, vector<64x4xbf16>
    tpu.vector_store %arg6[%c0_27, %c32], %22 {strides = array<i32>} : memref<64x36xbf16, #tpu.memory_space<vmem>>, vector<64x4xbf16>,
    %c0_28 = arith.constant 0 : index
    %c0_29 = arith.constant 0 : index
    %24 = vector.load %arg6[%c0_28, %c0_29] : memref<64x36xbf16, #tpu.memory_space<vmem>>, vector<64x36xbf16>
    %c0_30 = arith.constant 0 : index
    %c0_31 = arith.constant 0 : index
    %25 = vector.load %arg3[%c0_30, %c0_31] : memref<36x128xbf16, #tpu.memory_space<vmem>>, vector<36x128xbf16>
    %cst = arith.constant dense<0.000000e+00> : vector<64x128xf32>
    %26 = tpu.matmul %24, %25, %cst {dimension_numbers = #tpu.dot_dimension_numbers<[1], [0], [0], [1], [0, 0, 1, 1], [], []>} : vector<64x36xbf16>, vector<36x128xbf16>, vector<64x128xf32> -> vector<64x128xf32>
    %c0_32 = arith.constant 0 : index
    %c0_33 = arith.constant 0 : index
    %27 = vector.load %arg4[%c0_32, %c0_33] : memref<1x128xf32, #tpu.memory_space<vmem>>, vector<1x128xf32>
    %28 = vector.broadcast %27 : vector<1x128xf32> to vector<64x128xf32>
    %29 = arith.addf %26, %28 : vector<64x128xf32>
    %30 = arith.truncf %29 : vector<64x128xf32> to vector<64x128xbf16>
    %c0_34 = arith.constant 0 : index
    %c0_35 = arith.constant 0 : index
    %c0_36 = arith.constant 0 : index
    %31 = vector.load %arg5[%c0_34, %c0_35, %c0_36] : memref<1x64x128xbf16, #tpu.memory_space<vmem>>, vector<1x64x128xbf16>
    %32 = vector.shape_cast %31 : vector<1x64x128xbf16> to vector<64x128xbf16>
    %33 = vector.shape_cast %30 : vector<64x128xbf16> to vector<1x64x128xbf16>
    tpu.vector_store %arg5[%c0_34, %c0_35, %c0_36], %33 {strides = array<i32>} : memref<1x64x128xbf16, #tpu.memory_space<vmem>>, vector<1x64x128xbf16>,
    return
  }
  func.func @transform_0(%arg0: i32, %arg1: i32) -> (i32, i32, i32, i32) {
    %c0_i32 = arith.constant 0 : i32
    %c0_i32_0 = arith.constant 0 : i32
    %c0_i32_1 = arith.constant 0 : i32
    return %arg0, %arg1, %c0_i32, %c0_i32_0 : i32, i32, i32, i32
  }
  func.func @transform_1(%arg0: i32, %arg1: i32) -> (i32, i32) {
    %c0_i32 = arith.constant 0 : i32
    %c0_i32_0 = arith.constant 0 : i32
    %c0_i32_1 = arith.constant 0 : i32
    return %c0_i32, %c0_i32_0 : i32, i32
  }
  func.func @transform_2(%arg0: i32, %arg1: i32) -> (i32, i32) {
    %c0_i32 = arith.constant 0 : i32
    %c0_i32_0 = arith.constant 0 : i32
    %c0_i32_1 = arith.constant 0 : i32
    return %c0_i32, %c0_i32_0 : i32, i32
  }
  func.func @transform_3(%arg0: i32, %arg1: i32) -> (i32, i32, i32) {
    %c0_i32 = arith.constant 0 : i32
    %c0_i32_0 = arith.constant 0 : i32
    return %arg0, %arg1, %c0_i32 : i32, i32, i32
  }
}

</mosaic_0001>

<bundles_post_ra>
// kernel: downsample_forward_nhwc.1
= control target key start
LH: loop header
LB: loop body
LE: loop exit
PB: predicated region body
PF: predicated region fallthrough
CT: control target
= control target key end

     0   :  { %s1175_s12 = smov 0   ;;  %s1177_s13 = smov 0   ;;  %s1444_s0 = inlined_call_operand.vmem [shape: bf16[2,8,9,24], index: 0, kind: input, shape index: {}]   ;;  %s1445_s1 = inlined_call_operand.vmem [shape: bf16[36,128], index: 1, kind: input, shape index: {}]   ;;  %s1446_s2 = inlined_call_operand.vmem [shape: f32[1,128], index: 2, kind: input, shape index: {}]   ;;  %s1447_s3 = inlined_call_operand.vmem [shape: bf16[2,64,128], index: 3, kind: output, shape index: {}]  }
   0x1   :  { %s1179_s14 = smov 0  }
   0x2 LB: > { %s25_s15 = sadd.s32 1, %s1145_s13  ;;  %p1023_p0 = scmp.ge.s32.totalorder %s1149_s14, 1  ;;  %s1149_s14 = sphi %s1179_s14, %s13_s14   ;;  %s1145_s13 = sphi %s1177_s13, %s1451_s13   ;;  %s1141_s12 = sphi %s1175_s12, %s1450_s12  }
   0x3   : > { %p27_p1 = scmp.ge.s32.totalorder %s25_s15, 2  ;;  %p159_p2 = scmp.lt.s32.totalorder %s1149_s14, 3 }
   0x5   : > { %s1453_s15 = smov (%p27_p1, %s25_s15), 0  ;;  %p160_p3 = pnand %p1023_p0, %p159_p2 }
   0x6   : > { %p193_p4 = scmp.lt.s32.totalorder (!%p160_p3), %s1141_s12, 1  ;;  %s1151_s20 = smov (!%p160_p3), 4  }
   0x7   : > { %163 = sbr.rel (%p160_p3) target bundleno = 384 (0x180), region = 32  ;;  %s1152_s21 = smov (!%p160_p3), 8  }
   0x8   : > { %s1153_s22 = smov (!%p160_p3), 12   ;;  %s1154_s23 = smov (!%p160_p3), 16  }
   0xc   : > { %s1455_s12 = smov (!%p193_p4, %s1141_s12), 1  ;;  %vm247_vm0 = vsmask.f32 3328  ;;  %vm248_vm1 = vsmask.f32 7440  ;;  %vm222_vm3 = vcmask 60416  }
   0xd   : > { %s1058_s16 = sshll.u32 %s1455_s12, 6  ;;  %vm1214_vm2 = vmor %vm247_vm0, %vm248_vm1  ;;  %vm880_vm4 = vcmask 1041408   ;;  %vm386_vm5 = vcmask 93248   ;;  %vm435_vm6 = vcmask 158816   ;;  %vm596_vm7 = vcmask 191648   ;;  %s1059_s5 = sshll.u32 %s1455_s12, 5 }
   0xe   : > { %s1199_s19 = scalar_lea.vmem %s1444_s0, %s1058_s16  ;;  %vm645_vm8 = vcmask 257216   ;;  %vm806_vm9 = vcmask 290048   ;;  %vm867_vm10 = vcmask 293888   ;;  %s211_s8 = scalar_lea.vmem %s1447_s3, %s1059_s5 }
   0xf   : > { %v402_v0 = vld [vmem:[%s1199_s19 + $0x38] sm:$0xf]  ;;  %v401_v1 = vld [vmem:[%s1199_s19 + $0x30] sm:$0xf]  ;;  %v244_v3 = vld [vmem:[%s1199_s19 + $0x34] sm:$0x1] }
  0x10   : > { %v243_v2 = vld [vmem:[%s1199_s19 + $0x30] sm:$0xf]  ;;  %425 = vrot.lane.b32.xlu1 %v402_v0, %s1151_s20  ;;  %423 = vrot.lane.b32.xlu0 %v401_v1, %s1151_s20  ;;  %v239_v6 = vld [vmem:[%s1199_s19 + $0x20] sm:$0xf]  ;;  %v344_v7 = vshll.u32 %v244_v3, 16 }
  0x11   : > { %v335_v4 = vshrl.u32 %v243_v2, 16  ;;  %v338_v5 = vshll.u32 %v243_v2, 16  ;;  %v240_v8 = vld [vmem:[%s1199_s19 + $0x24] sm:$0x1]  ;;  %v307_v9 = vshrl.u32 %v239_v6, 16  ;;  %v310_v10 = vshll.u32 %v239_v6, 16 }
  0x12   : > { %v316_v13 = vshll.u32 %v240_v8, 16  ;;  %v245_v14 = vld [vmem:[%s1199_s19 + $0x38] sm:$0xf]  ;;  %v346_v15 = vrot.slane %v344_v7, 5  ;;  %v246_v18 = vld [vmem:[%s1199_s19 + $0x3c] sm:$0x1] }
  0x13   : > { %v337_v11 = vrot.slane %v335_v4, 4  ;;  %v340_v12 = vrot.slane %v338_v5, 5  ;;  %v309_v16 = vrot.slane %v307_v9, 4  ;;  %v312_v17 = vrot.slane %v310_v10, 5  ;;  %v241_v24 = vld [vmem:[%s1199_s19 + $0x28] sm:$0xf] }
  0x14   : > { %v349_v19 = vshrl.u32 %v245_v14, 16  ;;  %v318_v21 = vrot.slane %v316_v13, 5  ;;  %v352_v22 = vshll.u32 %v245_v14, 16  ;;  %v358_v23 = vshll.u32 %v246_v18, 16  ;;  %v242_v28 = vld [vmem:[%s1199_s19 + $0x2c] sm:$0x1] }
  0x15   : > { %v341_v20 = vor.u32 %v340_v12, %v337_v11  ;;  %v313_v26 = vor.u32 %v312_v17, %v309_v16  ;;  %v321_v29 = vshrl.u32 %v241_v24, 16  ;;  %v324_v30 = vshll.u32 %v241_v24, 16  ;;  %v399_v34 = vld [vmem:[%s1199_s19 + $0x20] sm:$0xf]  ;;  %v456_v38 = vld [vmem:[%s1199_s19 + $0x30] sm:$0xf] }
  0x16   : > { %v351_v27 = vrot.slane %v349_v19, 4  ;;  %v354_v32 = vrot.slane %v352_v22, 5  ;;  %v330_v33 = vshll.u32 %v242_v28, 16  ;;  %419 = vrot.lane.b32.xlu2 %v399_v34, %s1151_s20  ;;  %v360_v41 = vrot.slane %v358_v23, 5  ;;  %v454_v43 = vld [vmem:[%s1199_s19 + $0x28] sm:$0xf] }
  0x17   : > { %v342_v31 = vrot.slane %v341_v20, 4  ;;  %v314_v35 = vrot.slane %v313_v26, 4  ;;  %v323_v36 = vrot.slane %v321_v29, 4  ;;  %v326_v37 = vrot.slane %v324_v30, 5  ;;  %v457_v49 = vld [vmem:[%s1199_s19 + $0x34] sm:$0x1] }
  0x18   : > { %v355_v40 = vor.u32 %v354_v32, %v351_v27  ;;  %v545_v42 = vshrl.u32 %v456_v38, 16  ;;  %v332_v46 = vrot.slane %v330_v33, 5  ;;  %v548_v47 = vshll.u32 %v456_v38, 16  ;;  %v455_v55 = vld [vmem:[%s1199_s19 + $0x2c] sm:$0x1] }
  0x19   : > { %v347_v39 = vsel %vm1214_vm2, %v342_v31, %v346_v15  ;;  %v319_v44 = vsel %vm1214_vm2, %v314_v35, %v318_v21  ;;  %v327_v45 = vor.u32 %v326_v37, %v323_v36  ;;  %v531_v51 = vshrl.u32 %v454_v43, 16  ;;  %v400_v56 = vld [vmem:[%s1199_s19 + $0x28] sm:$0xf]  ;;  %v452_v59 = vld [vmem:[%s1199_s19 + $0x20] sm:$0xf] }
  0x1a   : > { %374 = vrot.lane.b32.xlu1 %v347_v39, %s1152_s21  ;;  %370 = vrot.lane.b32.xlu0 %v319_v44, %s1152_s21  ;;  %v356_v48 = vrot.slane %v355_v40, 4  ;;  %v547_v50 = vrot.slane %v545_v42, 4  ;;  %v534_v52 = vshll.u32 %v454_v43, 16  ;;  %v550_v54 = vrot.slane %v548_v47, 5  ;;  %v453_v60 = vld [vmem:[%s1199_s19 + $0x24] sm:$0x1] }
  0x1b   : > { %v328_v53 = vrot.slane %v327_v45, 4  ;;  %v533_v57 = vrot.slane %v531_v51, 4  ;;  %v554_v61 = vshll.u32 %v457_v49, 16  ;;  %v517_v62 = vshrl.u32 %v452_v59, 16  ;;  %v458_v7 = vld [vmem:[%s1199_s19 + $0x38] sm:$0xf] }
  0x1c   : > { %v536_v58 = vrot.slane %v534_v52, 5  ;;  %v361_v63 = vsel %vm1214_vm2, %v356_v48, %v360_v41  ;;  %v551_v0 = vor.u32 %v550_v54, %v547_v50  ;;  %v520_v1 = vshll.u32 %v452_v59, 16  ;;  %v459_v10 = vld [vmem:[%s1199_s19 + $0x3c] sm:$0x1]  ;;  %v662_v15 = vld [vmem:[%s1199_s19 + $0x20] sm:$0xf] }
  0x1d   : > { %v526_v2 = vshll.u32 %v453_v60, 16  ;;  %v333_v3 = vsel %vm1214_vm2, %v328_v53, %v332_v46  ;;  %v540_v5 = vshll.u32 %v455_v55, 16  ;;  %v519_v6 = vrot.slane %v517_v62, 4  ;;  %v664_v32 = vld [vmem:[%s1199_s19 + $0x28] sm:$0xf] }
  0x1e   : > { %v537_v4 = vor.u32 %v536_v58, %v533_v57  ;;  %421 = vrot.lane.b32.xlu2 %v400_v56, %s1151_s20  ;;  %v522_v8 = vrot.slane %v520_v1, 5  ;;  %v556_v9 = vrot.slane %v554_v61, 5  ;;  %v559_v11 = vshrl.u32 %v458_v7, 16  ;;  %v668_v35 = vld [vmem:[%s1199_s19 + $0x38] sm:$0xf] }
  0x1f   : > { %v552_v12 = vrot.slane %v551_v0, 4  ;;  %v528_v14 = vrot.slane %v526_v2, 5  ;;  %v562_v16 = vshll.u32 %v458_v7, 16  ;;  %v542_v18 = vrot.slane %v540_v5, 5  ;;  %v663_v36 = vld [vmem:[%s1199_s19 + $0x24] sm:$0x1] }
  0x20   : > { %v523_v13 = vor.u32 %v522_v8, %v519_v6  ;;  %v538_v17 = vrot.slane %v537_v4, 4  ;;  %v561_v19 = vrot.slane %v559_v11, 4  ;;  %v568_v22 = vshll.u32 %v459_v10, 16  ;;  %v666_v38 = vld [vmem:[%s1199_s19 + $0x30] sm:$0xf] }
  0x21   : > { %v564_v21 = vrot.slane %v562_v16, 5  ;;  %v727_v23 = vshrl.u32 %v662_v15, 16  ;;  %v557_v24 = vsel %vm1214_vm2, %v552_v12, %v556_v9  ;;  %v730_v27 = vshll.u32 %v662_v15, 16  ;;  %v610_v43 = vld [vmem:[%s1199_s19 + $0x28] sm:$0xf] }
  0x22   : > { %376 = vrot.lane.b32.xlu1 %v361_v63, %s1152_s21  ;;  %372 = vrot.lane.b32.xlu0 %v333_v3, %s1152_s21  ;;  %v524_v20 = vrot.slane %v523_v13, 4  ;;  %v543_v29 = vsel %vm1214_vm2, %v538_v17, %v542_v18  ;;  %v570_v31 = vrot.slane %v568_v22, 5  ;;  %v741_v39 = vshrl.u32 %v664_v32, 16  ;;  %v609_v46 = vld [vmem:[%s1199_s19 + $0x20] sm:$0xf] }
  0x23   : > { %v565_v28 = vor.u32 %v564_v21, %v561_v19  ;;  %v729_v33 = vrot.slane %v727_v23, 4  ;;  %v732_v34 = vrot.slane %v730_v27, 5  ;;  %v769_v40 = vshrl.u32 %v668_v35, 16  ;;  %v665_v53 = vld [vmem:[%s1199_s19 + $0x2c] sm:$0x1] }
  0x24   : > { %v529_v26 = vsel %vm1214_vm2, %v524_v20, %v528_v14  ;;  %v772_v41 = vshll.u32 %v668_v35, 16  ;;  %v744_v42 = vshll.u32 %v664_v32, 16  ;;  %v736_v45 = vshll.u32 %v663_v36, 16  ;;  %v669_v56 = vld [vmem:[%s1199_s19 + $0x3c] sm:$0x1] }
  0x25   : > { %v566_v30 = vrot.slane %v565_v28, 4  ;;  %v733_v44 = vor.u32 %v732_v34, %v729_v33  ;;  %v755_v47 = vshrl.u32 %v666_v38, 16  ;;  %v758_v48 = vshll.u32 %v666_v38, 16  ;;  %v667_v57 = vld [vmem:[%s1199_s19 + $0x34] sm:$0x1] }
  0x26   : > { %580 = vrot.lane.b32.xlu2 %v529_v26, %s1153_s22  ;;  %v743_v49 = vrot.slane %v741_v39, 4  ;;  %v746_v50 = vrot.slane %v744_v42, 5  ;;  %v771_v51 = vrot.slane %v769_v40, 4  ;;  %v774_v52 = vrot.slane %v772_v41, 5  ;;  %v235_v60 = vld [vmem:[%s1199_s19 + $0x10] sm:$0xf] }
  0x27   : > { %v571_v37 = vsel %vm1214_vm2, %v566_v30, %v570_v31  ;;  %v734_v54 = vrot.slane %v733_v44, 4  ;;  %v738_v55 = vrot.slane %v736_v45, 5  ;;  %v757_v58 = vrot.slane %v755_v47, 4  ;;  %v611_v61 = vld [vmem:[%s1199_s19 + $0x30] sm:$0xf] }
  0x28   : > { %v760_v59 = vrot.slane %v758_v48, 5  ;;  %v233_v62 = vld [vmem:[%s1199_s19 + $0x8] sm:$0xf]  ;;  %v747_v63 = vor.u32 %v746_v50, %v743_v49  ;;  %v750_v0 = vshll.u32 %v665_v53, 16  ;;  %v775_v1 = vor.u32 %v774_v52, %v771_v51  ;;  %v612_v6 = vld [vmem:[%s1199_s19 + $0x38] sm:$0xf] }
  0x29   : > { %v778_v2 = vshll.u32 %v669_v56, 16  ;;  %v739_v3 = vsel %vm1214_vm2, %v734_v54, %v738_v55  ;;  %v279_v4 = vshrl.u32 %v235_v60, 16  ;;  %v282_v5 = vshll.u32 %v235_v60, 16  ;;  %v231_v13 = vld [vmem:[%s1199_s19] sm:$0xf] }
  0x2a   : > { %584 = vrot.lane.b32.xlu1 %v557_v24, %s1153_s22  ;;  %582 = vrot.lane.b32.xlu0 %v543_v29, %s1153_s22  ;;  %v761_v7 = vor.u32 %v760_v59, %v757_v58  ;;  %v764_v8 = vshll.u32 %v667_v57, 16  ;;  %v265_v9 = vshrl.u32 %v233_v62, 16  ;;  %v268_v10 = vshll.u32 %v233_v62, 16  ;;  %v236_v22 = vld [vmem:[%s1199_s19 + $0x14] sm:$0x1] }
  0x2b   : > { %v748_v11 = vrot.slane %v747_v63, 4  ;;  %v752_v12 = vrot.slane %v750_v0, 5  ;;  %v776_v14 = vrot.slane %v775_v1, 4  ;;  %v780_v15 = vrot.slane %v778_v2, 5  ;;  %v234_v26 = vld [vmem:[%s1199_s19 + $0xc] sm:$0x1] }
  0x2c   : > { %v281_v16 = vrot.slane %v279_v4, 4  ;;  %v284_v17 = vrot.slane %v282_v5, 5  ;;  %v251_v18 = vshrl.u32 %v231_v13, 16  ;;  %v254_v19 = vshll.u32 %v231_v13, 16  ;;  %v232_v28 = vld [vmem:[%s1199_s19 + $0x4] sm:$0x1] }
  0x2d   : > { %v762_v20 = vrot.slane %v761_v7, 4  ;;  %v766_v21 = vrot.slane %v764_v8, 5  ;;  %v267_v23 = vrot.slane %v265_v9, 4  ;;  %v270_v24 = vrot.slane %v268_v10, 5  ;;  %v237_v40 = vld [vmem:[%s1199_s19 + $0x18] sm:$0xf] }
  0x2e   : > { %586 = vrot.lane.b32.xlu2 %v571_v37, %s1153_s22  ;;  %v753_v27 = vsel %vm1214_vm2, %v748_v11, %v752_v12  ;;  %v253_v29 = vrot.slane %v251_v18, 4  ;;  %v256_v30 = vrot.slane %v254_v19, 5  ;;  %v781_v31 = vsel %vm1214_vm2, %v776_v14, %v780_v15  ;;  %v444_v48 = vld [vmem:[%s1199_s19] sm:$0xf]  ;;  %v238_v52 = vld [vmem:[%s1199_s19 + $0x1c] sm:$0x1] }
  0x2f   : > { %v285_v32 = vor.u32 %v284_v17, %v281_v16  ;;  %v288_v33 = vshll.u32 %v236_v22, 16  ;;  %v260_v34 = vshll.u32 %v232_v28, 16  ;;  %v767_v35 = vsel %vm1214_vm2, %v762_v20, %v766_v21  ;;  %v450_v0 = vld [vmem:[%s1199_s19 + $0x18] sm:$0xf]  ;;  %v448_v1 = vld [vmem:[%s1199_s19 + $0x10] sm:$0xf] }
  0x30   : > { %v271_v36 = vor.u32 %v270_v24, %v267_v23  ;;  %v274_v37 = vshll.u32 %v234_v26, 16  ;;  %v257_v38 = vor.u32 %v256_v30, %v253_v29  ;;  %v293_v42 = vshrl.u32 %v237_v40, 16  ;;  %v396_v4 = vld [vmem:[%s1199_s19 + $0x8] sm:$0xf]  ;;  %v395_v8 = vld [vmem:[%s1199_s19] sm:$0xf] }
  0x31   : > { %v262_v39 = vrot.slane %v260_v34, 5  ;;  %v286_v44 = vrot.slane %v285_v32, 4  ;;  %v290_v45 = vrot.slane %v288_v33, 5  ;;  %v302_v54 = vshll.u32 %v238_v52, 16  ;;  %v446_v11 = vld [vmem:[%s1199_s19 + $0x8] sm:$0xf] }
  0x32   : > { %631 = vrot.lane.b32.xlu1 %v610_v43, %s1152_s21  ;;  %629 = vrot.lane.b32.xlu0 %v609_v46, %s1152_s21  ;;  %v258_v41 = vrot.slane %v257_v38, 4  ;;  %v296_v43 = vshll.u32 %v237_v40, 16  ;;  %v272_v46 = vrot.slane %v271_v36, 4  ;;  %v276_v47 = vrot.slane %v274_v37, 5  ;;  %v451_v15 = vld [vmem:[%s1199_s19 + $0x1c] sm:$0x1] }
  0x33   : > { %v295_v49 = vrot.slane %v293_v42, 4  ;;  %v291_v55 = vsel %vm1214_vm2, %v286_v44, %v290_v45  ;;  %v461_v56 = vshrl.u32 %v444_v48, 16  ;;  %v464_v57 = vshll.u32 %v444_v48, 16  ;;  %v449_v19 = vld [vmem:[%s1199_s19 + $0x14] sm:$0x1] }
  0x34   : > { %v298_v50 = vrot.slane %v296_v43, 5  ;;  %v263_v51 = vsel %vm1214_vm2, %v258_v41, %v262_v39  ;;  %v277_v58 = vsel %vm1214_vm2, %v272_v46, %v276_v47  ;;  %v304_v60 = vrot.slane %v302_v54, 5  ;;  %v397_v23 = vld [vmem:[%s1199_s19 + $0x10] sm:$0xf]  ;;  %v447_v24 = vld [vmem:[%s1199_s19 + $0xc] sm:$0x1] }
  0x35   : > { %v463_v62 = vrot.slane %v461_v56, 4  ;;  %v466_v63 = vrot.slane %v464_v57, 5  ;;  %v506_v7 = vshll.u32 %v450_v0, 16  ;;  %v489_v9 = vshrl.u32 %v448_v1, 16  ;;  %v398_v32 = vld [vmem:[%s1199_s19 + $0x18] sm:$0xf] }
  0x36   : > { %633 = vrot.lane.b32.xlu2 %v611_v61, %s1152_s21  ;;  %v299_v53 = vor.u32 %v298_v50, %v295_v49  ;;  %v445_v61 = vld [vmem:[%s1199_s19 + $0x4] sm:$0x1]  ;;  %v492_v10 = vshll.u32 %v448_v1, 16  ;;  %v475_v13 = vshrl.u32 %v446_v11, 16  ;;  %v478_v18 = vshll.u32 %v446_v11, 16 }
  0x37   : > { %v467_v5 = vor.u32 %v466_v63, %v463_v62  ;;  %v508_v17 = vrot.slane %v506_v7, 5  ;;  %v491_v20 = vrot.slane %v489_v9, 4  ;;  %v512_v30 = vshll.u32 %v451_v15, 16  ;;  %v656_v39 = vld [vmem:[%s1199_s19 + $0x8] sm:$0xf] }
  0x38   : > { %v300_v59 = vrot.slane %v299_v53, 4  ;;  %v494_v21 = vrot.slane %v492_v10, 5  ;;  %v477_v22 = vrot.slane %v475_v13, 4  ;;  %v480_v26 = vrot.slane %v478_v18, 5  ;;  %v654_v42 = vld [vmem:[%s1199_s19] sm:$0xf] }
  0x39   : > { %v468_v14 = vrot.slane %v467_v5, 4  ;;  %v498_v34 = vshll.u32 %v449_v19, 16  ;;  %v514_v38 = vrot.slane %v512_v30, 5  ;;  %v685_v44 = vshrl.u32 %v656_v39, 16  ;;  %v657_v50 = vld [vmem:[%s1199_s19 + $0xc] sm:$0x1] }
  0x3a   : > { %790 = vrot.lane.b32.xlu1 %v739_v3, %s1154_s23  ;;  %635 = vrot.lane.b32.xlu0 %v612_v6, %s1152_s21  ;;  %v305_v2 = vsel %vm1214_vm2, %v300_v59, %v304_v60  ;;  %v470_v3 = vshll.u32 %v445_v61, 16  ;;  %v503_v6 = vshrl.u32 %v450_v0, 16  ;;  %v495_v33 = vor.u32 %v494_v21, %v491_v20  ;;  %v660_v56 = vld [vmem:[%s1199_s19 + $0x18] sm:$0xf]  ;;  %v607_v60 = vld [vmem:[%s1199_s19 + $0x10] sm:$0xf] }
  0x3b   : > { %v500_v41 = vrot.slane %v498_v34, 5  ;;  %v688_v45 = vshll.u32 %v656_v39, 16  ;;  %v671_v47 = vshrl.u32 %v654_v42, 16  ;;  %v674_v48 = vshll.u32 %v654_v42, 16  ;;  %v606_v1 = vld [vmem:[%s1199_s19 + $0x8] sm:$0xf] }
  0x3c   : > { %v472_v12 = vrot.slane %v470_v3, 5  ;;  %v505_v16 = vrot.slane %v503_v6, 4  ;;  %v496_v40 = vrot.slane %v495_v33, 4  ;;  %v694_v57 = vshll.u32 %v657_v50, 16  ;;  %v658_v3 = vld [vmem:[%s1199_s19 + $0x10] sm:$0xf] }
  0x3d   : > { %v690_v52 = vrot.slane %v688_v45, 5  ;;  %v673_v53 = vrot.slane %v671_v47, 4  ;;  %v676_v54 = vrot.slane %v674_v48, 5  ;;  %v713_v63 = vshrl.u32 %v660_v56, 16  ;;  %v661_v9 = vld [vmem:[%s1199_s19 + $0x1c] sm:$0x1] }
  0x3e   : > { %792 = vrot.lane.b32.xlu2 %v753_v27, %s1154_s23  ;;  %v484_v27 = vshll.u32 %v447_v24, 16  ;;  %v473_v28 = vsel %vm1214_vm2, %v468_v14, %v472_v12  ;;  %v509_v29 = vor.u32 %v508_v17, %v505_v16  ;;  %v501_v49 = vsel %vm1214_vm2, %v496_v40, %v500_v41  ;;  %v220_v12 = vld [vmem:[%s1199_s19 + $0x30] sm:$0xf]  ;;  %v218_v13 = vld [vmem:[%s1199_s19 + $0x20] sm:$0xf] }
  0x3f   : > { %v677_v61 = vor.u32 %v676_v54, %v673_v53  ;;  %v716_v0 = vshll.u32 %v660_v56, 16  ;;  %v699_v5 = vshrl.u32 %v658_v3, 16  ;;  %v702_v6 = vshll.u32 %v658_v3, 16  ;;  %v608_v16 = vld [vmem:[%s1199_s19 + $0x18] sm:$0xf]  ;;  %v1064_v45 = vld [vmem:[%s1445_s1] sm:$0xff] }
  0x40   : > { %v486_v36 = vrot.slane %v484_v27, 5  ;;  %v510_v37 = vrot.slane %v509_v29, 4  ;;  %v715_v10 = vrot.slane %v713_v63, 4  ;;  %229 = vst.msk [vmem:[#allocation2 + $0x18] sm:$0xf] %vm222_vm3, %v220_v12 }
  0x41   : > { %v678_v7 = vrot.slane %v677_v61, 4  ;;  %v718_v11 = vrot.slane %v716_v0, 5  ;;  %v701_v14 = vrot.slane %v699_v5, 4  ;;  %v704_v15 = vrot.slane %v702_v6, 5  ;;  %v659_v17 = vld [vmem:[%s1199_s19 + $0x14] sm:$0x1] }
  0x42   : > { %796 = vrot.lane.b32.xlu1 %v781_v31, %s1154_s23  ;;  %794 = vrot.lane.b32.xlu0 %v767_v35, %s1154_s23  ;;  %v481_v31 = vor.u32 %v480_v26, %v477_v22  ;;  %v515_v46 = vsel %vm1214_vm2, %v510_v37, %v514_v38  ;;  %227 = vst.msk [vmem:[#allocation2 + $0x10] sm:$0xf] %vm222_vm3, %v218_v13  ;;  %v708_v19 = vshll.u32 %v659_v17, 16  ;;  %v221_v30 = vld [vmem:[%s1199_s19 + $0x38] sm:$0xf] }
  0x43   : > { %v705_v18 = vor.u32 %v704_v15, %v701_v14  ;;  %v719_v22 = vor.u32 %v718_v11, %v715_v10  ;;  %230 = vst.msk [vmem:[#allocation2 + $0x1c] sm:$0xf] %vm222_vm3, %v221_v30  ;;  %v827_v38 = vld [vmem:[%s1445_s1 + $0x10] sm:$0x3]  ;;  %v215_v53 = vld [vmem:[%s1199_s19 + $0x8] sm:$0xf] }
  0x44   : > { %v482_v35 = vrot.slane %v481_v31, 4  ;;  %v710_v26 = vrot.slane %v708_v19, 5  ;;  %v861_v39 = vunpack.c.l.b16 %v827_v38  ;;  %v214_v54 = vld [vmem:[%s1199_s19] sm:$0xf]  ;;  %224 = vst.msk [vmem:[#allocation2 + $0x4] sm:$0xf] %vm222_vm3, %v215_v53 }
  0x45   : > { %v706_v24 = vrot.slane %v705_v18, 4  ;;  %223 = vst.msk [vmem:[#allocation2] sm:$0xf] %vm222_vm3, %v214_v54 }
  0x46   : > { %362 = vrot.lane.b32.xlu2 %v263_v51, %s1152_s21  ;;  %v487_v43 = vsel %vm1214_vm2, %v482_v35, %v486_v36  ;;  %v687_v51 = vrot.slane %v685_v44, 4  ;;  %v864_v40 = vpack.c.b16 %v861_v39, %v861_v39  ;;  %v1065_v44 = vld [vmem:[%s1445_s1 + $0x8] sm:$0xff] }
  0x47   : > { %v711_v31 = vsel %vm1214_vm2, %v706_v24, %v710_v26 }
  0x48   : > { %v691_v59 = vor.u32 %v690_v52, %v687_v51  ;;  %v882_v42 = vsel %vm880_vm4, %v864_v40, 0  ;;  %v216_v52 = vld [vmem:[%s1199_s19 + $0x10] sm:$0xf] }
  0x49   : > { %1090 = vmatpush.bf16.msra.mxu2 %v882_v42  ;;  %1091 = vmatpush.bf16.msra.mxu3 %v882_v42  ;;  %225 = vst.msk [vmem:[#allocation2 + $0x8] sm:$0xf] %vm222_vm3, %v216_v52 }
  0x4a   : > { %366 = vrot.lane.b32.xlu1 %v291_v55, %s1152_s21  ;;  %364 = vrot.lane.b32.xlu0 %v277_v58, %s1152_s21  ;;  %v655_v55 = vld [vmem:[%s1199_s19 + $0x4] sm:$0x1]  ;;  %v605_v58 = vld [vmem:[%s1199_s19] sm:$0xf] }
  0x4b   : > { %v680_v62 = vshll.u32 %v655_v55, 16  ;;  %889 = vmatpush.bf16.msra.mxu0 %v882_v42  ;;  %1089 = vmatpush.bf16.msra.mxu1 %v882_v42 }
  0x4d   : > { %1093 = vmatpush.bf16.msra.mxu2 %v1065_v44  ;;  %1094 = vmatpush.bf16.msra.mxu3 %v1065_v44 }
  0x4e   : > { %368 = vrot.lane.b32.xlu2 %v305_v2, %s1152_s21  ;;  %v696_v2 = vrot.slane %v694_v57, 5 }
  0x4f   : > { %890 = vmatpush.bf16.msra.mxu0 %v1065_v44  ;;  %1092 = vmatpush.bf16.msra.mxu1 %v1065_v44 }
  0x51   : > { %1096 = vmatpush.bf16.msra.mxu2 %v1064_v45  ;;  %1097 = vmatpush.bf16.msra.mxu3 %v1064_v45 }
  0x52   : > { %413 = vrot.lane.b32.xlu1 %v396_v4, %s1151_s20  ;;  %411 = vrot.lane.b32.xlu0 %v395_v8, %s1151_s20  ;;  %v692_v4 = vrot.slane %v691_v59, 4  ;;  %v682_v8 = vrot.slane %v680_v62, 5 }
  0x53   : > { %891 = vmatpush.bf16.msra.mxu0 %v1064_v45  ;;  %1095 = vmatpush.bf16.msra.mxu1 %v1064_v45 }
  0x54   : > { %v697_v20 = vsel %vm1214_vm2, %v692_v4, %v696_v2  ;;  %v683_v21 = vsel %vm1214_vm2, %v678_v7, %v682_v8 }
  0x56   : > { %415 = vrot.lane.b32.xlu2 %v397_v23, %s1151_s20  ;;  %v722_v23 = vshll.u32 %v661_v9, 16 }
  0x58   : > { %v724_v29 = vrot.slane %v722_v23, 5  ;;  %v1126_v23 = vld [vmem:[%s1446_s2] ss:$0 sm:$0xff] }
  0x5a   : > { %572 = vrot.lane.b32.xlu1 %v473_v28, %s1153_s22  ;;  %417 = vrot.lane.b32.xlu0 %v398_v32, %s1151_s20  ;;  %v720_v28 = vrot.slane %v719_v22, 4  ;;  %v219_v32 = vld [vmem:[%s1199_s19 + $0x28] sm:$0xf] }
  0x5b   : > { %228 = vst.msk [vmem:[#allocation2 + $0x14] sm:$0xf] %vm222_vm3, %v219_v32 }
  0x5c   : > { %v725_v33 = vsel %vm1214_vm2, %v720_v28, %v724_v29 }
  0x5e   : > { %574 = vrot.lane.b32.xlu2 %v487_v43, %s1153_s22 }
  0x62   : > { %578 = vrot.lane.b32.xlu1 %v515_v46, %s1153_s22  ;;  %576 = vrot.lane.b32.xlu0 %v501_v49, %s1153_s22 }
  0x66   : > { %621 = vrot.lane.b32.xlu2 %v605_v58, %s1152_s21  ;;  %v217_v58 = vld [vmem:[%s1199_s19 + $0x18] sm:$0xf] }
  0x67   : > { %226 = vst.msk [vmem:[#allocation2 + $0xc] sm:$0xf] %vm222_vm3, %v217_v58 }
  0x6a   : > { %625 = vrot.lane.b32.xlu1 %v607_v60, %s1152_s21  ;;  %623 = vrot.lane.b32.xlu0 %v606_v1, %s1152_s21 }
  0x6e   : > { %627 = vrot.lane.b32.xlu2 %v608_v16, %s1152_s21 }
  0x70   : > { %v420_v27 = vpop.permute.xlu2 %419 }
  0x72   : > { %784 = vrot.lane.b32.xlu1 %v697_v20, %s1154_s23  ;;  %782 = vrot.lane.b32.xlu0 %v683_v21, %s1154_s23 }
  0x76   : > { %786 = vrot.lane.b32.xlu2 %v711_v31, %s1154_s23 }
  0x78   : > { %v422_v34 = vpop.permute.xlu2 %421 }
  0x7a   : > { %788 = vrot.lane.b32.xlu0 %v725_v33, %s1154_s23 }
  0x80   : > { %v581_v35 = vpop.permute.xlu2 %580 }
  0x82   : > { %v426_v36 = vpop.permute.xlu1 %425  ;;  %v424_v37 = vpop.permute.xlu0 %423 }
  0x88   : > { %v587_v41 = vpop.permute.xlu2 %586 }
  0x8c   : > { %v375_v25 = vpop.permute.xlu1 %374  ;;  %v371_v43 = vpop.permute.xlu0 %370 }
  0x8d   : > { %393 = vst.msk [vmem:[#allocation2 + $0x18] sm:$0xf] %vm386_vm5, %v375_v25 }
  0x8e   : > { %391 = vst.msk [vmem:[#allocation2 + $0x10] sm:$0xf] %vm386_vm5, %v371_v43 }
  0x8f   : > { %440 = vst.msk [vmem:[#allocation2 + $0x10] sm:$0xf] %vm435_vm6, %v420_v27 }
  0x90   : > { %601 = vst.msk [vmem:[#allocation2 + $0x10] sm:$0xf] %vm596_vm7, %v581_v35  ;;  %v634_v46 = vpop.permute.xlu2 %633 }
  0x91   : > { %442 = vst.msk [vmem:[#allocation2 + $0x18] sm:$0xf] %vm435_vm6, %v424_v37 }
  0x94   : > { %v377_v47 = vpop.permute.xlu1 %376  ;;  %v373_v48 = vpop.permute.xlu0 %372 }
  0x95   : > { %394 = vst.msk [vmem:[#allocation2 + $0x1c] sm:$0xf] %vm386_vm5, %v377_v47 }
  0x96   : > { %443 = vst.msk [vmem:[#allocation2 + $0x1c] sm:$0xf] %vm435_vm6, %v426_v36 }
  0x97   : > { %392 = vst.msk [vmem:[#allocation2 + $0x14] sm:$0xf] %vm386_vm5, %v373_v48 }
  0x98   : > { %441 = vst.msk [vmem:[#allocation2 + $0x14] sm:$0xf] %vm435_vm6, %v422_v34  ;;  %v793_v49 = vpop.permute.xlu2 %792 }
  0x99   : > { %604 = vst.msk [vmem:[#allocation2 + $0x1c] sm:$0xf] %vm596_vm7, %v587_v41 }
  0x9c   : > { %v585_v50 = vpop.permute.xlu1 %584  ;;  %v583_v51 = vpop.permute.xlu0 %582 }
  0x9d   : > { %603 = vst.msk [vmem:[#allocation2 + $0x18] sm:$0xf] %vm596_vm7, %v585_v50 }
  0x9e   : > { %602 = vst.msk [vmem:[#allocation2 + $0x14] sm:$0xf] %vm596_vm7, %v583_v51 }
  0x9f   : > { %652 = vst.msk [vmem:[#allocation2 + $0x18] sm:$0xf] %vm645_vm8, %v634_v46 }
  0xa0   : > { %v363_v55 = vpop.permute.xlu2 %362 }
  0xa1   : > { %387 = vst.msk [vmem:[#allocation2] sm:$0xf] %vm386_vm5, %v363_v55 }
  0xa4   : > { %v632_v56 = vpop.permute.xlu1 %631  ;;  %v630_v57 = vpop.permute.xlu0 %629 }
  0xa5   : > { %651 = vst.msk [vmem:[#allocation2 + $0x14] sm:$0xf] %vm645_vm8, %v632_v56 }
  0xa6   : > { %650 = vst.msk [vmem:[#allocation2 + $0x10] sm:$0xf] %vm645_vm8, %v630_v57 }
  0xa7   : > { %812 = vst.msk [vmem:[#allocation2 + $0x14] sm:$0xf] %vm806_vm9, %v793_v49 }
  0xa8   : > { %v369_v59 = vpop.permute.xlu2 %368 }
  0xa9   : > { %390 = vst.msk [vmem:[#allocation2 + $0xc] sm:$0xf] %vm386_vm5, %v369_v59 }
  0xac   : > { %v791_v60 = vpop.permute.xlu1 %790  ;;  %v636_v61 = vpop.permute.xlu0 %635 }
  0xad   : > { %811 = vst.msk [vmem:[#allocation2 + $0x10] sm:$0xf] %vm806_vm9, %v791_v60 }
  0xae   : > { %653 = vst.msk [vmem:[#allocation2 + $0x1c] sm:$0xf] %vm645_vm8, %v636_v61 }
  0xb0   : > { %v416_v0 = vpop.permute.xlu2 %415 }
  0xb4   : > { %v797_v62 = vpop.permute.xlu1 %796  ;;  %v1062_v63 = vld [vmem:[#allocation2 + $0x10] sm:$0xff]  ;;  %v795_v1 = vpop.permute.xlu0 %794 }
  0xb5   : > { %814 = vst.msk [vmem:[#allocation2 + $0x1c] sm:$0xf] %vm806_vm9, %v797_v62  ;;  %1054 = vmatmul.msk.bf16.vlgmr.msra.gmra.mxu2 %vm867_vm10, %v1062_v63 }
  0xb6   : > { %813 = vst.msk [vmem:[#allocation2 + $0x18] sm:$0xf] %vm806_vm9, %v795_v1 }
  0xb8   : > { %v575_v5 = vpop.permute.xlu2 %574 }
  0xbc   : > { %v367_v2 = vpop.permute.xlu1 %366  ;;  %v365_v3 = vpop.permute.xlu0 %364 }
  0xbd   : > { %389 = vst.msk [vmem:[#allocation2 + $0x8] sm:$0xf] %vm386_vm5, %v367_v2  ;;  %v1063_v4 = vld [vmem:[#allocation2 + $0x18] sm:$0xff] }
  0xbe   : > { %388 = vst.msk [vmem:[#allocation2 + $0x4] sm:$0xf] %vm386_vm5, %v365_v3  ;;  %1055 = vmatmul.msk.bf16.vlgmr.msra.gmra.mxu3 %vm867_vm10, %v1063_v4 }
  0xbf   : > { %438 = vst.msk [vmem:[#allocation2 + $0x8] sm:$0xf] %vm435_vm6, %v416_v0 }
  0xc0   : > { %v622_v8 = vpop.permute.xlu2 %621 }
  0xc4   : > { %v414_v6 = vpop.permute.xlu1 %413  ;;  %v412_v7 = vpop.permute.xlu0 %411 }
  0xc5   : > { %437 = vst.msk [vmem:[#allocation2 + $0x4] sm:$0xf] %vm435_vm6, %v414_v6 }
  0xc6   : > { %436 = vst.msk [vmem:[#allocation2] sm:$0xf] %vm435_vm6, %v412_v7 }
  0xc7   : > { %598 = vst.msk [vmem:[#allocation2 + $0x4] sm:$0xf] %vm596_vm7, %v575_v5 }
  0xc8   : > { %v628_v11 = vpop.permute.xlu2 %627 }
  0xcc   : > { %v573_v9 = vpop.permute.xlu1 %572  ;;  %v418_v10 = vpop.permute.xlu0 %417 }
  0xcd   : > { %597 = vst.msk [vmem:[#allocation2] sm:$0xf] %vm596_vm7, %v573_v9 }
  0xce   : > { %439 = vst.msk [vmem:[#allocation2 + $0xc] sm:$0xf] %vm435_vm6, %v418_v10 }
  0xcf   : > { %646 = vst.msk [vmem:[#allocation2] sm:$0xf] %vm645_vm8, %v622_v8 }
  0xd0   : > { %v787_v15 = vpop.permute.xlu2 %786 }
  0xd4   : > { %v579_v12 = vpop.permute.xlu1 %578  ;;  %v577_v13 = vpop.permute.xlu0 %576 }
  0xd5   : > { %600 = vst.msk [vmem:[#allocation2 + $0xc] sm:$0xf] %vm596_vm7, %v579_v12 }
  0xd6   : > { %599 = vst.msk [vmem:[#allocation2 + $0x8] sm:$0xf] %vm596_vm7, %v577_v13 }
  0xd7   : > { %649 = vst.msk [vmem:[#allocation2 + $0xc] sm:$0xf] %vm645_vm8, %v628_v11 }
  0xdc   : > { %v626_v14 = vpop.permute.xlu1 %625  ;;  %v624_v16 = vpop.permute.xlu0 %623 }
  0xdd   : > { %648 = vst.msk [vmem:[#allocation2 + $0x8] sm:$0xf] %vm645_vm8, %v626_v14 }
  0xde   : > { %647 = vst.msk [vmem:[#allocation2 + $0x4] sm:$0xf] %vm645_vm8, %v624_v16 }
  0xdf   : > { %809 = vst.msk [vmem:[#allocation2 + $0x8] sm:$0xf] %vm806_vm9, %v787_v15 }
  0xe4   : > { %v785_v17 = vpop.permute.xlu1 %784  ;;  %v783_v18 = vpop.permute.xlu0 %782 }
  0xe5   : > { %808 = vst.msk [vmem:[#allocation2 + $0x4] sm:$0xf] %vm806_vm9, %v785_v17 }
  0xe6   : > { %807 = vst.msk [vmem:[#allocation2] sm:$0xf] %vm806_vm9, %v783_v18 }
  0xec   : > { %v789_v19 = vpop.permute.xlu0 %788 }
  0xed   : > { %v1060_v20 = vld [vmem:[#allocation2] sm:$0xff]  ;;  %810 = vst.msk [vmem:[#allocation2 + $0xc] sm:$0xf] %vm806_vm9, %v789_v19 }
  0xee   : > { %1052 = vmatmul.msk.bf16.vlgmr.msra.gmra.mxu0 %vm867_vm10, %v1060_v20 }
  0xf4   : > { %v1061_v21 = vld [vmem:[#allocation2 + $0x8] sm:$0xff] }
  0xf5   : > { %1053 = vmatmul.msk.bf16.vlgmr.msra.gmra.mxu1 %vm867_vm10, %v1061_v21 }
 0x138   : > { %v903_v22 = vpop.f32.mrf.mxu2 }
 0x139   : > { %v904_v24 = vadd.f32 %v1126_v23, %v903_v22 }
 0x140   : > { %v905_v26 = vpop.f32.mrf.mxu2 }
 0x141   : > { %v906_v27 = vadd.f32 %v1126_v23, %v905_v26  ;;  %v908_v28 = vpop.f32.mrf.mxu3 }
 0x142   : > { %v909_v31 = vadd.f32 %v1126_v23, %v908_v28 }
 0x143   : > { %v1079_v29 = vpack.c.bf16 %v906_v27, %v904_v24 }
 0x145   : > { %1087 = vst [vmem:[%s211_s8 + $0x10] sm:$0xff] %v1079_v29  }
 0x149   : > { %v910_v30 = vpop.f32.mrf.mxu3 }
 0x14a   : > { %v911_v32 = vadd.f32 %v1126_v23, %v910_v30 }
 0x14c   : > { %v1084_v33 = vpack.c.bf16 %v911_v32, %v909_v31 }
 0x14e   : > { %1088 = vst [vmem:[%s211_s8 + $0x18] sm:$0xff] %v1084_v33  }
 0x16b   : > { %v893_v34 = vpop.f32.mrf.mxu0 }
 0x16c   : > { %v894_v37 = vadd.f32 %v1126_v23, %v893_v34 }
 0x172   : > { %v898_v36 = vpop.f32.mrf.mxu1 }
 0x173   : > { %v895_v35 = vpop.f32.mrf.mxu0  ;;  %v899_v41 = vadd.f32 %v1126_v23, %v898_v36 }
 0x174   : > { %v896_v38 = vadd.f32 %v1126_v23, %v895_v35 }
 0x176   : > { %v1069_v39 = vpack.c.bf16 %v896_v38, %v894_v37 }
 0x178   : > { %1070 = vst [vmem:[%s211_s8] sm:$0xff] %v1069_v39  }
 0x17a   : > { %v900_v40 = vpop.f32.mrf.mxu1 }
 0x17b   : > { %v901_v42 = vadd.f32 %v1126_v23, %v900_v40 }
 0x17d   : > { %v1074_v25 = vpack.c.bf16 %v901_v42, %v899_v41 }
 0x17f   : > { %1086 = vst [vmem:[%s211_s8 + $0x8] sm:$0xff] %v1074_v25  }
 0x180 PF: > { %s13_s14 = sadd.s32 1, %s1149_s14   ;;  %s1450_s12 = smov %s1145_s13 }
 0x181   : > { %p10_p5 = scmp.ge.s32.totalorder %s13_s14, 4   ;;  %s1451_s13 = smov %s1453_s15 }
 0x183   :  { %12 = sbr.rel (!%p10_p5) target bundleno = 2 (0x2), region = 62 }

</bundles_post_ra>
